<compile_context>
chip_gen: v6e
topology: v6e:2x2x1
jax: 0.10.0
libtpu: 0.0.40
codegen_flags: <defaults>
</compile_context>

<pallas_src>
import functools

import jax
import jax.numpy as jnp
from jax.experimental import pallas as pl
from jax.experimental.pallas import tpu as pltpu

LANES = 128
ROW_TILE_MAX = 8192                      # (8192, 128) f32 tile = 4 MiB per input per buffer
VMEM_LIMIT_BYTES = 48 * 1024 * 1024      # explicit scoped-VMEM limit (v5e default is 16 MiB)
NUM_MOMENTS = 5                          # sum(p), sum(t), sum(p*p), sum(t*t), sum(p*t)
ALPHA = 0.05
EPS = 1e-8


def _round_up(x, m):
    return ((x + m - 1) // m) * m


def _detect_tensorcores(default=2):
    """Best-effort TensorCore count (2 on v7x megacore, else 1); never raises."""
    try:
        info = pltpu.get_tpu_info()
    except Exception:
        return default
    for name in ("num_tensorcores", "tensorcores_per_chip", "num_cores",
                 "cores_per_chip", "core_count"):
        v = getattr(info, name, None)
        if isinstance(v, int) and v > 0:
            return max(1, min(2, v))
    return default


def _moments_kernel(p_ref, t_ref, out_ref, acc_ref, *, rows, row_tile,
                    tiles_per_core, num_tiles, last_tile_partial, has_phantom):
    c = pl.program_id(0)          # core-split ("parallel") axis
    i = pl.program_id(1)          # streaming / reduction ("arbitrary") axis

    @pl.when(i == 0)
    def _init():
        acc_ref[...] = jnp.zeros_like(acc_ref)

    def fold(x):
        # (row_tile, 128) -> (8, 128): pure VPU vreg adds, no cross-lane XLU work and no
        # per-step SMEM scalar round trips.
        return jnp.sum(x.reshape(row_tile // 8, 8, LANES), axis=0)

    def accumulate(masked):
        p = p_ref[...].astype(jnp.float32)
        t = t_ref[...].astype(jnp.float32)
        if masked:
            # Zero out rows past the real data (only the partial tail tile runs this).
            g_row0 = (c * tiles_per_core + i) * row_tile
            row_ids = jax.lax.broadcasted_iota(jnp.int32, (row_tile, LANES), 0) + g_row0
            valid = row_ids < rows
            p = jnp.where(valid, p, 0.0)
            t = jnp.where(valid, t, 0.0)
        acc_ref[0] += fold(p)
        acc_ref[1] += fold(t)
        acc_ref[2] += fold(p * p)
        acc_ref[3] += fold(t * t)
        acc_ref[4] += fold(p * t)

    g = c * tiles_per_core + i    # global tile index

    # Fast unmasked path: every real, fully-covered tile.
    plain_cond = None
    if has_phantom:
        plain_cond = g < num_tiles
    if last_tile_partial:
        not_tail = g != (num_tiles - 1)
        plain_cond = not_tail if plain_cond is None else jnp.logical_and(plain_cond, not_tail)

    if plain_cond is None:
        accumulate(masked=False)
    else:
        @pl.when(plain_cond)
        def _plain():
            accumulate(masked=False)

    # Masked path: only the (single) partial tail tile. Phantom tiles (g >= num_tiles)
    # match neither branch and contribute nothing.
    if last_tile_partial:
        @pl.when(g == num_tiles - 1)
        def _tail():
            accumulate(masked=True)

    @pl.when(i == pl.num_programs(1) - 1)
    def _write():
        out_ref[0] = acc_ref[...]


def _sums_f32(p, t):
    p = p.astype(jnp.float32)
    t = t.astype(jnp.float32)
    return (jnp.sum(p), jnp.sum(t), jnp.sum(p * p), jnp.sum(t * t), jnp.sum(p * t))


def _finalize(sums, n, alpha, eps):
    s_p, s_t, s_pp, s_tt, s_pt = sums
    nf = jnp.float32(n)
    mean_p = s_p / nf
    mean_t = s_t / nf
    # MSE reconstructed from the raw moments (dedicated diff**2 moment dropped in the
    # kernel). Clamp at 0: cancellation can round slightly negative when y_pred ~= y_true.
    mse = jnp.maximum(s_pp + s_tt - 2.0 * s_pt, 0.0) / nf        # nn.MSELoss default (mean)
    num = s_pt - nf * mean_p * mean_t                            # sum(vx*vy)
    var_p = s_pp - nf * mean_p * mean_p                          # sum(vx**2)
    var_t = s_tt - nf * mean_t * mean_t                          # sum(vy**2)
    denom = jnp.sqrt(jnp.maximum(var_p * var_t, 0.0)) + jnp.float32(eps)
    pearson_loss = 1.0 - num / denom
    return jnp.float32(alpha) * mse + jnp.float32(1.0 - alpha) * pearson_loss


def combined_loss(y_pred, y_true, alpha=ALPHA, eps=EPS):
    assert y_pred.shape == y_true.shape
    n = int(y_pred.size)

    flat_p = y_pred.reshape(-1)           # contiguous reshape: no data movement
    flat_t = y_true.reshape(-1)

    rows, tail_count = divmod(n, LANES)

    if rows == 0:
        # Fewer than 128 elements: pure-JAX fallback, a kernel launch is not worth it.
        return _finalize(_sums_f32(flat_p, flat_t), n, alpha, eps)

    body = rows * LANES
    if tail_count:
        # The <=127-element lane tail is reduced on the JAX side; no full-tensor pad.
        # (The body slice below may still copy once in XLA; a manual-DMA path could make
        # the ragged case fully zero-copy, but the pad-zero writes are already gone.)
        p2 = flat_p[:body].reshape(rows, LANES)
        t2 = flat_t[:body].reshape(rows, LANES)
    else:
        p2 = flat_p.reshape(rows, LANES)  # free bitcast reshape
        t2 = flat_t.reshape(rows, LANES)

    row_tile = min(ROW_TILE_MAX, _round_up(rows, 8))
    num_tiles = -(-rows // row_tile)

    ncores = max(1, min(_detect_tensorcores(), num_tiles))
    if ncores > 1 and (num_tiles % ncores) and num_tiles < 4 * ncores:
        ncores = 1            # phantom tile would be a big fraction of a small problem
    tiles_per_core = -(-num_tiles // ncores)
    has_phantom = ncores * tiles_per_core > num_tiles
    last_tile_partial = num_tiles * row_tile > rows

    def in_map(c, i):
        # Clamp so any trailing "phantom" slot re-reads a valid tile; the kernel's
        # pl.when gates skip its accumulation entirely.
        return (jnp.minimum(c * tiles_per_core + i, num_tiles - 1), 0)

    kernel = functools.partial(
        _moments_kernel, rows=rows, row_tile=row_tile,
        tiles_per_core=tiles_per_core, num_tiles=num_tiles,
        last_tile_partial=last_tile_partial, has_phantom=has_phantom)

    partials = pl.pallas_call(
        kernel,
        out_shape=jax.ShapeDtypeStruct((ncores, NUM_MOMENTS, 8, LANES), jnp.float32),
        grid_spec=pltpu.PrefetchScalarGridSpec(
            num_scalar_prefetch=0,
            grid=(ncores, tiles_per_core),
            in_specs=[pl.BlockSpec((row_tile, LANES), in_map),
                      pl.BlockSpec((row_tile, LANES), in_map)],
            out_specs=pl.BlockSpec((1, NUM_MOMENTS, 8, LANES), lambda c, i: (c, 0, 0, 0)),
            scratch_shapes=[pltpu.VMEM((NUM_MOMENTS, 8, LANES), jnp.float32)],
        ),
        compiler_params=pltpu.CompilerParams(
            dimension_semantics=("parallel", "arbitrary"),
            vmem_limit_bytes=VMEM_LIMIT_BYTES),
    )(p2, t2)

    # Tiny finalize in plain JAX.
    m = jnp.sum(partials, axis=(0, 2, 3))
    sums = (m[0], m[1], m[2], m[3], m[4])
    if tail_count:
        tail_sums = _sums_f32(flat_p[body:], flat_t[body:])
        sums = tuple(a + b for a, b in zip(sums, tail_sums))
    return _finalize(sums, n, alpha, eps)


def combined_loss_ref(y_pred, y_true, alpha=ALPHA, eps=EPS):
    """Pure-JAX reference mirroring the PyTorch CombinedLoss exactly."""
    y_pred = y_pred.astype(jnp.float32)
    y_true = y_true.astype(jnp.float32)
    mse = jnp.mean((y_pred - y_true) ** 2)
    vx = y_pred - jnp.mean(y_pred)
    vy = y_true - jnp.mean(y_true)
    num = jnp.sum(vx * vy)
    denom = jnp.sqrt(jnp.sum(vx**2) * jnp.sum(vy**2)) + eps
    pearson_loss = 1.0 - num / denom
    return alpha * mse + (1.0 - alpha) * pearson_loss


if __name__ == "__main__":
    key = jax.random.PRNGKey(0)

    def make_pair(k, shape, dtype=jnp.float32):
        k1, k2 = jax.random.split(k)
        yp = jax.random.normal(k1, shape, dtype=jnp.float32)
        yt = 0.7 * yp + 0.3 * jax.random.normal(k2, shape, dtype=jnp.float32)
        return yp.astype(dtype), yt.astype(dtype)

    keys = jax.random.split(key, 5)

    # Main example: NCHW regression output, batch=2, channels=4, spatial=16.
    yp, yt = make_pair(keys[0], (2, 4, 16, 16))
    loss = combined_loss(yp, yt)
    jax.block_until_ready(loss)
    ref = combined_loss_ref(yp, yt)
    assert jnp.allclose(loss, ref, rtol=1e-4, atol=1e-5), (loss, ref)

    # Ragged element count: JAX-side lane tail + in-kernel partial-tile mask.
    yp2, yt2 = make_pair(keys[1], (3, 5, 7, 11))
    l2, r2 = combined_loss(yp2, yt2), combined_loss_ref(yp2, yt2)
    assert jnp.allclose(l2, r2, rtol=1e-4, atol=1e-5), (l2, r2)

    # Larger bf16 input: native-dtype streaming, single full tile.
    yp3, yt3 = make_pair(keys[2], (5, 13, 64, 64), dtype=jnp.bfloat16)
    l3, r3 = combined_loss(yp3, yt3), combined_loss_ref(yp3, yt3)
    assert jnp.allclose(l3, r3, rtol=1e-3, atol=1e-4), (l3, r3)

    # Multi-tile accumulation path (16384 rows -> two 8192-row tiles, core split if avail).
    yp4, yt4 = make_pair(keys[3], (16, 16, 128, 64))
    l4, r4 = combined_loss(yp4, yt4), combined_loss_ref(yp4, yt4)
    assert jnp.allclose(l4, r4, rtol=1e-3, atol=1e-5), (l4, r4)

    # Tiny input (< 128 elements): pure-JAX fallback path.
    yp5, yt5 = make_pair(keys[4], (4, 7))
    l5, r5 = combined_loss(yp5, yt5), combined_loss_ref(yp5, yt5)
    assert jnp.allclose(l5, r5, rtol=1e-4, atol=1e-5), (l5, r5)

    print("KERNEL_OK")
</pallas_src>

<mosaic_0001>
module attributes {stable_mosaic.version = 11 : i64} {
  func.func @_moments_kernel(%arg0: i32, %arg1: i32, %arg2: memref<16x128xf32, #tpu.memory_space<vmem>>, %arg3: memref<16x128xf32, #tpu.memory_space<vmem>>, %arg4: memref<1x5x8x128xf32, #tpu.memory_space<vmem>>, %arg5: memref<5x8x128xf32, #tpu.memory_space<vmem>>) attributes {dimension_semantics = [#tpu.dimension_semantics<parallel>, #tpu.dimension_semantics<arbitrary>], iteration_bounds = array<i64: 1, 1>, scalar_prefetch = 0 : i64, scratch_operands = 1 : i64, tpu.core_type = #tpu.core_type<tc>, window_params = [{transform_indices = @transform_0, window_bounds = array<i64: 16, 128>}, {transform_indices = @transform_1, window_bounds = array<i64: 16, 128>}, {transform_indices = @transform_2, window_bounds = array<i64: 1, 5, 8, 128>}]} {
    %c0_i32 = arith.constant 0 : i32
    %0 = arith.cmpi eq, %arg1, %c0_i32 : i32
    %1 = arith.extui %0 : i1 to i32
    %c0_i32_0 = arith.constant 0 : i32
    %2 = arith.cmpi ne, %1, %c0_i32_0 : i32
    scf.if %2 {
      %cst_36 = arith.constant 0.000000e+00 : f32
      %51 = vector.broadcast %cst_36 : f32 to vector<5x8x128xf32>
      %c0_37 = arith.constant 0 : index
      %c0_38 = arith.constant 0 : index
      %c0_39 = arith.constant 0 : index
      %52 = vector.load %arg5[%c0_37, %c0_38, %c0_39] : memref<5x8x128xf32, #tpu.memory_space<vmem>>, vector<5x8x128xf32>
      tpu.vector_store %arg5[%c0_37, %c0_38, %c0_39], %51 {strides = array<i32>} : memref<5x8x128xf32, #tpu.memory_space<vmem>>, vector<5x8x128xf32>,
    } else {
    }
    %c0 = arith.constant 0 : index
    %c0_1 = arith.constant 0 : index
    %3 = vector.load %arg2[%c0, %c0_1] : memref<16x128xf32, #tpu.memory_space<vmem>>, vector<16x128xf32>
    %c0_2 = arith.constant 0 : index
    %c0_3 = arith.constant 0 : index
    %4 = vector.load %arg3[%c0_2, %c0_3] : memref<16x128xf32, #tpu.memory_space<vmem>>, vector<16x128xf32>
    %c0_4 = arith.constant 0 : index
    %c0_5 = arith.constant 0 : index
    %c0_6 = arith.constant 0 : index
    %5 = vector.load %arg5[%c0_4, %c0_5, %c0_6] : memref<5x8x128xf32, #tpu.memory_space<vmem>>, vector<1x8x128xf32>
    %6 = vector.shape_cast %5 : vector<1x8x128xf32> to vector<8x128xf32>
    %7 = vector.shape_cast %3 : vector<16x128xf32> to vector<2x8x128xf32>
    %cst = arith.constant dense<0.000000e+00> : vector<8x128xf32>
    %8 = vector.multi_reduction <add>, %7, %cst [0] : vector<2x8x128xf32> to vector<8x128xf32>
    %9 = arith.addf %6, %8 : vector<8x128xf32>
    %c0_7 = arith.constant 0 : index
    %c0_8 = arith.constant 0 : index
    %c0_9 = arith.constant 0 : index
    %10 = vector.load %arg5[%c0_7, %c0_8, %c0_9] : memref<5x8x128xf32, #tpu.memory_space<vmem>>, vector<1x8x128xf32>
    %11 = vector.shape_cast %10 : vector<1x8x128xf32> to vector<8x128xf32>
    %12 = vector.shape_cast %9 : vector<8x128xf32> to vector<1x8x128xf32>
    tpu.vector_store %arg5[%c0_7, %c0_8, %c0_9], %12 {strides = array<i32>} : memref<5x8x128xf32, #tpu.memory_space<vmem>>, vector<1x8x128xf32>,
    %c1 = arith.constant 1 : index
    %c0_10 = arith.constant 0 : index
    %c0_11 = arith.constant 0 : index
    %13 = vector.load %arg5[%c1, %c0_10, %c0_11] : memref<5x8x128xf32, #tpu.memory_space<vmem>>, vector<1x8x128xf32>
    %14 = vector.shape_cast %13 : vector<1x8x128xf32> to vector<8x128xf32>
    %15 = vector.shape_cast %4 : vector<16x128xf32> to vector<2x8x128xf32>
    %cst_12 = arith.constant dense<0.000000e+00> : vector<8x128xf32>
    %16 = vector.multi_reduction <add>, %15, %cst_12 [0] : vector<2x8x128xf32> to vector<8x128xf32>
    %17 = arith.addf %14, %16 : vector<8x128xf32>
    %c1_13 = arith.constant 1 : index
    %c0_14 = arith.constant 0 : index
    %c0_15 = arith.constant 0 : index
    %18 = vector.load %arg5[%c1_13, %c0_14, %c0_15] : memref<5x8x128xf32, #tpu.memory_space<vmem>>, vector<1x8x128xf32>
    %19 = vector.shape_cast %18 : vector<1x8x128xf32> to vector<8x128xf32>
    %20 = vector.shape_cast %17 : vector<8x128xf32> to vector<1x8x128xf32>
    tpu.vector_store %arg5[%c1_13, %c0_14, %c0_15], %20 {strides = array<i32>} : memref<5x8x128xf32, #tpu.memory_space<vmem>>, vector<1x8x128xf32>,
    %c2 = arith.constant 2 : index
    %c0_16 = arith.constant 0 : index
    %c0_17 = arith.constant 0 : index
    %21 = vector.load %arg5[%c2, %c0_16, %c0_17] : memref<5x8x128xf32, #tpu.memory_space<vmem>>, vector<1x8x128xf32>
    %22 = vector.shape_cast %21 : vector<1x8x128xf32> to vector<8x128xf32>
    %23 = arith.mulf %3, %3 : vector<16x128xf32>
    %24 = vector.shape_cast %23 : vector<16x128xf32> to vector<2x8x128xf32>
    %cst_18 = arith.constant dense<0.000000e+00> : vector<8x128xf32>
    %25 = vector.multi_reduction <add>, %24, %cst_18 [0] : vector<2x8x128xf32> to vector<8x128xf32>
    %26 = arith.addf %22, %25 : vector<8x128xf32>
    %c2_19 = arith.constant 2 : index
    %c0_20 = arith.constant 0 : index
    %c0_21 = arith.constant 0 : index
    %27 = vector.load %arg5[%c2_19, %c0_20, %c0_21] : memref<5x8x128xf32, #tpu.memory_space<vmem>>, vector<1x8x128xf32>
    %28 = vector.shape_cast %27 : vector<1x8x128xf32> to vector<8x128xf32>
    %29 = vector.shape_cast %26 : vector<8x128xf32> to vector<1x8x128xf32>
    tpu.vector_store %arg5[%c2_19, %c0_20, %c0_21], %29 {strides = array<i32>} : memref<5x8x128xf32, #tpu.memory_space<vmem>>, vector<1x8x128xf32>,
    %c3 = arith.constant 3 : index
    %c0_22 = arith.constant 0 : index
    %c0_23 = arith.constant 0 : index
    %30 = vector.load %arg5[%c3, %c0_22, %c0_23] : memref<5x8x128xf32, #tpu.memory_space<vmem>>, vector<1x8x128xf32>
    %31 = vector.shape_cast %30 : vector<1x8x128xf32> to vector<8x128xf32>
    %32 = arith.mulf %4, %4 : vector<16x128xf32>
    %33 = vector.shape_cast %32 : vector<16x128xf32> to vector<2x8x128xf32>
    %cst_24 = arith.constant dense<0.000000e+00> : vector<8x128xf32>
    %34 = vector.multi_reduction <add>, %33, %cst_24 [0] : vector<2x8x128xf32> to vector<8x128xf32>
    %35 = arith.addf %31, %34 : vector<8x128xf32>
    %c3_25 = arith.constant 3 : index
    %c0_26 = arith.constant 0 : index
    %c0_27 = arith.constant 0 : index
    %36 = vector.load %arg5[%c3_25, %c0_26, %c0_27] : memref<5x8x128xf32, #tpu.memory_space<vmem>>, vector<1x8x128xf32>
    %37 = vector.shape_cast %36 : vector<1x8x128xf32> to vector<8x128xf32>
    %38 = vector.shape_cast %35 : vector<8x128xf32> to vector<1x8x128xf32>
    tpu.vector_store %arg5[%c3_25, %c0_26, %c0_27], %38 {strides = array<i32>} : memref<5x8x128xf32, #tpu.memory_space<vmem>>, vector<1x8x128xf32>,
    %c4 = arith.constant 4 : index
    %c0_28 = arith.constant 0 : index
    %c0_29 = arith.constant 0 : index
    %39 = vector.load %arg5[%c4, %c0_28, %c0_29] : memref<5x8x128xf32, #tpu.memory_space<vmem>>, vector<1x8x128xf32>
    %40 = vector.shape_cast %39 : vector<1x8x128xf32> to vector<8x128xf32>
    %41 = arith.mulf %3, %4 : vector<16x128xf32>
    %42 = vector.shape_cast %41 : vector<16x128xf32> to vector<2x8x128xf32>
    %cst_30 = arith.constant dense<0.000000e+00> : vector<8x128xf32>
    %43 = vector.multi_reduction <add>, %42, %cst_30 [0] : vector<2x8x128xf32> to vector<8x128xf32>
    %44 = arith.addf %40, %43 : vector<8x128xf32>
    %c4_31 = arith.constant 4 : index
    %c0_32 = arith.constant 0 : index
    %c0_33 = arith.constant 0 : index
    %45 = vector.load %arg5[%c4_31, %c0_32, %c0_33] : memref<5x8x128xf32, #tpu.memory_space<vmem>>, vector<1x8x128xf32>
    %46 = vector.shape_cast %45 : vector<1x8x128xf32> to vector<8x128xf32>
    %47 = vector.shape_cast %44 : vector<8x128xf32> to vector<1x8x128xf32>
    tpu.vector_store %arg5[%c4_31, %c0_32, %c0_33], %47 {strides = array<i32>} : memref<5x8x128xf32, #tpu.memory_space<vmem>>, vector<1x8x128xf32>,
    %c0_i32_34 = arith.constant 0 : i32
    %48 = arith.cmpi eq, %arg1, %c0_i32_34 : i32
    %49 = arith.extui %48 : i1 to i32
    %c0_i32_35 = arith.constant 0 : i32
    %50 = arith.cmpi ne, %49, %c0_i32_35 : i32
    scf.if %50 {
      %c0_36 = arith.constant 0 : index
      %c0_37 = arith.constant 0 : index
      %c0_38 = arith.constant 0 : index
      %51 = vector.load %arg5[%c0_36, %c0_37, %c0_38] : memref<5x8x128xf32, #tpu.memory_space<vmem>>, vector<5x8x128xf32>
      %c0_39 = arith.constant 0 : index
      %c0_40 = arith.constant 0 : index
      %c0_41 = arith.constant 0 : index
      %c0_42 = arith.constant 0 : index
      %52 = vector.load %arg4[%c0_39, %c0_40, %c0_41, %c0_42] : memref<1x5x8x128xf32, #tpu.memory_space<vmem>>, vector<1x5x8x128xf32>
      %53 = vector.shape_cast %52 : vector<1x5x8x128xf32> to vector<5x8x128xf32>
      %54 = vector.shape_cast %51 : vector<5x8x128xf32> to vector<1x5x8x128xf32>
      tpu.vector_store %arg4[%c0_39, %c0_40, %c0_41, %c0_42], %54 {strides = array<i32>} : memref<1x5x8x128xf32, #tpu.memory_space<vmem>>, vector<1x5x8x128xf32>,
    } else {
    }
    return
  }
  func.func @transform_0(%arg0: i32, %arg1: i32) -> (i32, i32) {
    %c1_i32 = arith.constant 1 : i32
    %0 = arith.muli %arg0, %c1_i32 : i32
    %1 = arith.addi %0, %arg1 : i32
    %c0_i32 = arith.constant 0 : i32
    %2 = arith.minsi %1, %c0_i32 : i32
    %c0_i32_0 = arith.constant 0 : i32
    %c0_i32_1 = arith.constant 0 : i32
    return %2, %c0_i32_0 : i32, i32
  }
  func.func @transform_1(%arg0: i32, %arg1: i32) -> (i32, i32) {
    %c1_i32 = arith.constant 1 : i32
    %0 = arith.muli %arg0, %c1_i32 : i32
    %1 = arith.addi %0, %arg1 : i32
    %c0_i32 = arith.constant 0 : i32
    %2 = arith.minsi %1, %c0_i32 : i32
    %c0_i32_0 = arith.constant 0 : i32
    %c0_i32_1 = arith.constant 0 : i32
    return %2, %c0_i32_0 : i32, i32
  }
  func.func @transform_2(%arg0: i32, %arg1: i32) -> (i32, i32, i32, i32) {
    %c0_i32 = arith.constant 0 : i32
    %c0_i32_0 = arith.constant 0 : i32
    %c0_i32_1 = arith.constant 0 : i32
    %c0_i32_2 = arith.constant 0 : i32
    return %arg0, %c0_i32, %c0_i32_0, %c0_i32_1 : i32, i32, i32, i32
  }
}

</mosaic_0001>

<bundles_post_ra>
// kernel: tpu_custom_call.1
= control target key start
LH: loop header
LB: loop body
LE: loop exit
PB: predicated region body
PF: predicated region fallthrough
CT: control target
= control target key end

     0   :  { %7 = vsyncpa [#allocation4], 0  ;;  %s247_s0 = inlined_call_operand.hbm [shape: f32[16,128], index: 0, kind: input, shape index: {}]   ;;  %s248_s1 = inlined_call_operand.hbm [shape: f32[16,128], index: 1, kind: input, shape index: {}]   ;;  %s249_s2 = inlined_call_operand.hbm [shape: f32[1,5,8,128], index: 2, kind: output, shape index: {}]  }
   0x1   :  { %8 = vsyncpa [#allocation7], 0 }
   0x2   :  { %9 = vsyncpa [#allocation5], 0  ;;  %s209_s9 = smov [#allocation3]  }
   0x3   :  { %s21_s10 = sshll.u32 %s209_s9, 4  ;;  %s22_s10 = int_to_ptr.vmem [resolvable:$true] %s21_s10 }
   0x4   :  { %s151_s11 = scalar_lea.vmem %s22_s10, 256  ;;  %p156_p1 = scmp.lt.s32.totalorder %s22_s10, %s22_s10 }
   0x5   :  { %p152_p0 = scmp.ne.s32.totalorder %s22_s10, %s151_s11  ;;  %p157_p2 = scmp.lt.s32.totalorder %s151_s11, %s151_s11 }
   0x7   :  { %p158_p3 = por %p157_p2, %p156_p1 }
   0x9   :  { %p159_p4 = pnand %p158_p3, %p152_p0 }
   0xb   :  { %162 = shalt.err (!%p159_p4)
}
   0xc   :  { %s210_s12 = smov 128   ;;  %s211_s13 = smov 8  }
   0xd   :  { %27 = dma.hbm_to_vmem [thread:$0]  %s247_s0, 256, %s22_s10, [#allocation4], %s210_s12, %s210_s12, %s211_s13  }
   0xe   :  { %s212_s16 = smov [#allocation6]  }
   0xf   :  { %s39_s17 = sshll.u32 %s212_s16, 4  ;;  %s40_s17 = int_to_ptr.vmem [resolvable:$true] %s39_s17 }
  0x10   :  { %s171_s18 = scalar_lea.vmem %s40_s17, 256  ;;  %p176_p6 = scmp.lt.s32.totalorder %s40_s17, %s40_s17 }
  0x11   :  { %p172_p5 = scmp.ne.s32.totalorder %s40_s17, %s171_s18  ;;  %p177_p7 = scmp.lt.s32.totalorder %s171_s18, %s171_s18 }
  0x13   :  { %p178_p8 = por %p177_p7, %p176_p6 }
  0x15   :  { %p179_p9 = pnand %p178_p8, %p172_p5 }
  0x17   :  { %182 = shalt.err (!%p179_p9)
}
  0x18   :  { %45 = dma.hbm_to_vmem [thread:$0]  %s248_s1, 256, %s40_s17, [#allocation7], %s210_s12, %s210_s12, %s211_s13  }
  0x19   :  { %203 = dma.done.wait [#allocation4], 256  }
  0x1a   :  { %204 = vsyncadd [#allocation4], 4294967040 }
  0x1b   :  { %205 = dma.done.wait [#allocation7], 256  }
  0x1c   :  { %206 = vsyncadd [#allocation7], 4294967040  ;;  %v69_v0 = vld [vmem:[#allocation3] sm:$0xff]  ;;  %v70_v1 = vld [vmem:[#allocation3 + $0x8] sm:$0xff]  ;;  %s213_s0 = smov [#allocation8]  }
  0x1d   :  { %v71_v2 = vld [vmem:[#allocation6] sm:$0xff]  ;;  %v74_v3 = vadd.f32 %v70_v1, %v69_v0  ;;  %v72_v4 = vld [vmem:[#allocation6 + $0x8] sm:$0xff]  ;;  %v84_v5 = vmul.f32 %v69_v0, %v69_v0  ;;  %v85_v6 = vmul.f32 %v70_v1, %v70_v1  ;;  %s121_s21 = sshll.u32 %s213_s0, 4  ;;  %s122_s21 = int_to_ptr.vmem [resolvable:$true] %s121_s21 }
  0x1e   :  { %v91_v7 = vmul.f32 %v71_v2, %v71_v2  ;;  %v79_v8 = vadd.f32 %v72_v4, %v71_v2  ;;  %v92_v9 = vmul.f32 %v72_v4, %v72_v4  ;;  %v98_v10 = vmul.f32 %v71_v2, %v69_v0  ;;  %s183_s1 = scalar_lea.vmem %s122_s21, 640  ;;  %p188_p11 = scmp.lt.s32.totalorder %s122_s21, %s122_s21 }
  0x1f   :  { %v99_v11 = vmul.f32 %v72_v4, %v70_v1  ;;  %111 = vst [vmem:[#allocation8] sm:$0xff] %v74_v3  ;;  %v86_v12 = vadd.f32 %v85_v6, %v84_v5  ;;  %p184_p10 = scmp.ne.s32.totalorder %s122_s21, %s183_s1  ;;  %p189_p12 = scmp.lt.s32.totalorder %s183_s1, %s183_s1 }
  0x20   :  { %112 = vst [vmem:[#allocation8 + $0x8] sm:$0xff] %v79_v8  ;;  %v93_v13 = vadd.f32 %v92_v9, %v91_v7 }
  0x21   :  { %v100_v14 = vadd.f32 %v99_v11, %v98_v10  ;;  %113 = vst [vmem:[#allocation8 + $0x10] sm:$0xff] %v86_v12  ;;  %p190_p13 = por %p189_p12, %p188_p11 }
  0x22   :  { %114 = vst [vmem:[#allocation8 + $0x18] sm:$0xff] %v93_v13 }
  0x23   :  { %115 = vst [vmem:[#allocation8 + $0x20] sm:$0xff] %v100_v14  ;;  %p191_p0 = pnand %p190_p13, %p184_p10 }
  0x25   :  { %194 = shalt.err (!%p191_p0)
}
  0x26   :  { %127 = dma.vmem_to_hbm [thread:$0]  %s122_s21, 640, %s249_s2, [#allocation5], %s210_s12, %s210_s12, %s211_s13  }
  0x27   :  { %207 = dma.done.wait [#allocation5], 640  }
  0x28   :  { %208 = vsyncadd [#allocation5], 4294966656 }
  0x29   :  { %131 = vsyncpa [#allocation4], 1 }
  0x2a   :  { %132 = vsyncpa [#allocation7], 1 }
  0x2b   :  { %133 = vsyncpa [#allocation5], 1 }

</bundles_post_ra>
